<compile_context>
chip_gen: v7x
topology: tpu7x:2x2x1
jax: 0.10.0
libtpu: 0.0.40
codegen_flags: <defaults>
</compile_context>

<pallas_src>
import functools

import jax
import jax.numpy as jnp
from jax.experimental import pallas as pl
from jax.experimental.pallas import tpu as pltpu


def _round_up(x, m):
    return ((x + m - 1) // m) * m


def cifernet_kernel(x_ref, w1_ref, b1_ref, w2_ref, b2_ref, o_ref):
    # layer1: Linear(IN -> HIDDEN) on the MXU (bf16 operands, f32 accumulate).
    h = jnp.dot(x_ref[...], w1_ref[...], preferred_element_type=jnp.float32)
    h = h + b1_ref[...]                    # (TILE_B, H) + (1, H) broadcast, f32
    # LeakyReLU (PyTorch default negative_slope = 0.01); max == where for slope<1.
    h = jnp.maximum(h, 0.01 * h)
    # layer2: Linear(HIDDEN -> NUM_CLASSES), again bf16 MXU + f32 accumulate.
    out = jnp.dot(h.astype(w2_ref.dtype), w2_ref[...],
                  preferred_element_type=jnp.float32)
    out = out + b2_ref[...]                # (TILE_B, C) + (1, C) broadcast, f32
    o_ref[...] = out.astype(o_ref.dtype)   # lane-dense (TILE_B, 128k) store


@functools.partial(jax.jit, static_argnames=("tile_b",))
def cifernet_forward(x, w1, b1, w2, b2, *, tile_b=256):
    B, in_features = x.shape
    hidden = w1.shape[1]
    num_classes = w2.shape[1]

    # Pad feature/class dims to 128 multiples (MXU-friendly, lane-dense output).
    in_p = _round_up(in_features, 128)
    hid_p = _round_up(hidden, 128)
    cls_p = _round_up(num_classes, 128)

    # Pad / tile the batch (sublane axis needs multiples of 8).
    b_pad = _round_up(B, 8)
    tb = min(tile_b, b_pad)
    b_pad = _round_up(b_pad, tb)
    grid = (b_pad // tb,)

    # Zero-padding keeps the math exact: padded K rows/cols contribute 0,
    # padded hidden units get bias 0 -> LeakyReLU(0)=0 -> contribute 0.
    x_p = jnp.pad(x, ((0, b_pad - B), (0, in_p - in_features))).astype(jnp.bfloat16)
    w1_p = jnp.pad(w1, ((0, in_p - in_features), (0, hid_p - hidden))).astype(jnp.bfloat16)
    b1_p = jnp.pad(b1, ((0, 0), (0, hid_p - hidden))).astype(jnp.float32)
    w2_p = jnp.pad(w2, ((0, hid_p - hidden), (0, cls_p - num_classes))).astype(jnp.bfloat16)
    b2_p = jnp.pad(b2, ((0, 0), (0, cls_p - num_classes))).astype(jnp.float32)

    out_padded = pl.pallas_call(
        cifernet_kernel,
        out_shape=jax.ShapeDtypeStruct((b_pad, cls_p), jnp.float32),
        grid=grid,
        in_specs=[
            # x: tiled over the batch grid axis.
            pl.BlockSpec((tb, in_p), lambda i: (i, 0)),
            # Weights / biases: constant index_map -> VMEM-resident across tiles.
            pl.BlockSpec((in_p, hid_p), lambda i: (0, 0)),
            pl.BlockSpec((1, hid_p), lambda i: (0, 0)),
            pl.BlockSpec((hid_p, cls_p), lambda i: (0, 0)),
            pl.BlockSpec((1, cls_p), lambda i: (0, 0)),
        ],
        out_specs=pl.BlockSpec((tb, cls_p), lambda i: (i, 0)),
        compiler_params=pltpu.CompilerParams(
            dimension_semantics=("parallel",)),
    )(x_p, w1_p, b1_p, w2_p, b2_p)

    # Slice back to the logical output.
    return out_padded[:B, :num_classes]


def init_params(key, in_features, hidden, num_classes):
    # Deterministic init mirroring nn.Linear's uniform(-1/sqrt(fan_in), 1/sqrt(fan_in)).
    # Weights are stored pre-transposed ([IN, HIDDEN], [HIDDEN, C]) so the kernel
    # computes x @ W directly (== PyTorch's x @ W.T + b).
    k1, k2, k3, k4 = jax.random.split(key, 4)
    bound1 = 1.0 / jnp.sqrt(in_features)
    bound2 = 1.0 / jnp.sqrt(hidden)
    w1 = jax.random.uniform(k1, (in_features, hidden), jnp.float32, -bound1, bound1)
    b1 = jax.random.uniform(k2, (1, hidden), jnp.float32, -bound1, bound1)
    w2 = jax.random.uniform(k3, (hidden, num_classes), jnp.float32, -bound2, bound2)
    b2 = jax.random.uniform(k4, (1, num_classes), jnp.float32, -bound2, bound2)
    return w1, b1, w2, b2


if __name__ == "__main__":
    # Small demo shapes consistent with the module; tile_b=32 -> grid of 2 batch tiles.
    B, IN, HIDDEN, NUM_CLASSES = 64, 32, 32, 10

    key = jax.random.PRNGKey(0)
    kx, kp = jax.random.split(key)
    x = jax.random.normal(kx, (B, IN), jnp.float32)
    w1, b1, w2, b2 = init_params(kp, IN, HIDDEN, NUM_CLASSES)

    out = cifernet_forward(x, w1, b1, w2, b2, tile_b=32)
    out = jax.block_until_ready(out)

    # Pure-JAX f32 reference (kernel uses bf16 MXU operands -> relaxed tolerance).
    h_ref = x @ w1 + b1
    h_ref = jnp.where(h_ref > 0, h_ref, 0.01 * h_ref)
    ref = h_ref @ w2 + b2

    assert out.shape == (B, NUM_CLASSES)
    assert jnp.allclose(out, ref, atol=5e-2, rtol=5e-2), "mismatch vs reference"

    print("KERNEL_OK")
</pallas_src>

<mosaic_0001>
module attributes {stable_mosaic.version = 11 : i64} {
  func.func @cifernet_kernel(%arg0: i32, %arg1: memref<32x128xbf16, #tpu.memory_space<vmem>>, %arg2: memref<128x128xbf16, #tpu.memory_space<vmem>>, %arg3: memref<1x128xf32, #tpu.memory_space<vmem>>, %arg4: memref<128x128xbf16, #tpu.memory_space<vmem>>, %arg5: memref<1x128xf32, #tpu.memory_space<vmem>>, %arg6: memref<32x128xf32, #tpu.memory_space<vmem>>) attributes {dimension_semantics = [#tpu.dimension_semantics<parallel>], iteration_bounds = array<i64: 2>, scalar_prefetch = 0 : i64, scratch_operands = 0 : i64, tpu.core_type = #tpu.core_type<tc>, window_params = [{transform_indices = @transform_0, window_bounds = array<i64: 32, 128>}, {pipeline_mode = #tpu.pipeline_mode<synchronous>, transform_indices = @transform_1, window_bounds = array<i64: 128, 128>}, {pipeline_mode = #tpu.pipeline_mode<synchronous>, transform_indices = @transform_2, window_bounds = array<i64: 1, 128>}, {pipeline_mode = #tpu.pipeline_mode<synchronous>, transform_indices = @transform_3, window_bounds = array<i64: 128, 128>}, {pipeline_mode = #tpu.pipeline_mode<synchronous>, transform_indices = @transform_4, window_bounds = array<i64: 1, 128>}, {transform_indices = @transform_5, window_bounds = array<i64: 32, 128>}]} {
    %c0 = arith.constant 0 : index
    %c0_0 = arith.constant 0 : index
    %0 = vector.load %arg1[%c0, %c0_0] : memref<32x128xbf16, #tpu.memory_space<vmem>>, vector<32x128xbf16>
    %c0_1 = arith.constant 0 : index
    %c0_2 = arith.constant 0 : index
    %1 = vector.load %arg2[%c0_1, %c0_2] : memref<128x128xbf16, #tpu.memory_space<vmem>>, vector<128x128xbf16>
    %cst = arith.constant dense<0.000000e+00> : vector<32x128xf32>
    %2 = tpu.matmul %0, %1, %cst {dimension_numbers = #tpu.dot_dimension_numbers<[1], [0], [0], [1], [0, 0, 1, 1], [], []>} : vector<32x128xbf16>, vector<128x128xbf16>, vector<32x128xf32> -> vector<32x128xf32>
    %c0_3 = arith.constant 0 : index
    %c0_4 = arith.constant 0 : index
    %3 = vector.load %arg3[%c0_3, %c0_4] : memref<1x128xf32, #tpu.memory_space<vmem>>, vector<1x128xf32>
    %4 = vector.broadcast %3 : vector<1x128xf32> to vector<32x128xf32>
    %5 = arith.addf %2, %4 : vector<32x128xf32>
    %cst_5 = arith.constant 0.00999999977 : f32
    %6 = vector.broadcast %cst_5 : f32 to vector<32x128xf32>
    %7 = arith.mulf %6, %5 : vector<32x128xf32>
    %8 = arith.maximumf %5, %7 : vector<32x128xf32>
    %9 = arith.truncf %8 : vector<32x128xf32> to vector<32x128xbf16>
    %c0_6 = arith.constant 0 : index
    %c0_7 = arith.constant 0 : index
    %10 = vector.load %arg4[%c0_6, %c0_7] : memref<128x128xbf16, #tpu.memory_space<vmem>>, vector<128x128xbf16>
    %cst_8 = arith.constant dense<0.000000e+00> : vector<32x128xf32>
    %11 = tpu.matmul %9, %10, %cst_8 {dimension_numbers = #tpu.dot_dimension_numbers<[1], [0], [0], [1], [0, 0, 1, 1], [], []>} : vector<32x128xbf16>, vector<128x128xbf16>, vector<32x128xf32> -> vector<32x128xf32>
    %c0_9 = arith.constant 0 : index
    %c0_10 = arith.constant 0 : index
    %12 = vector.load %arg5[%c0_9, %c0_10] : memref<1x128xf32, #tpu.memory_space<vmem>>, vector<1x128xf32>
    %13 = vector.broadcast %12 : vector<1x128xf32> to vector<32x128xf32>
    %14 = arith.addf %11, %13 : vector<32x128xf32>
    %c0_11 = arith.constant 0 : index
    %c0_12 = arith.constant 0 : index
    %15 = vector.load %arg6[%c0_11, %c0_12] : memref<32x128xf32, #tpu.memory_space<vmem>>, vector<32x128xf32>
    tpu.vector_store %arg6[%c0_11, %c0_12], %14 {strides = array<i32>} : memref<32x128xf32, #tpu.memory_space<vmem>>, vector<32x128xf32>,
    return
  }
  func.func @transform_0(%arg0: i32) -> (i32, i32) {
    %c0_i32 = arith.constant 0 : i32
    %c0_i32_0 = arith.constant 0 : i32
    return %arg0, %c0_i32 : i32, i32
  }
  func.func @transform_1(%arg0: i32) -> (i32, i32) {
    %c0_i32 = arith.constant 0 : i32
    %c0_i32_0 = arith.constant 0 : i32
    %c0_i32_1 = arith.constant 0 : i32
    return %c0_i32, %c0_i32_0 : i32, i32
  }
  func.func @transform_2(%arg0: i32) -> (i32, i32) {
    %c0_i32 = arith.constant 0 : i32
    %c0_i32_0 = arith.constant 0 : i32
    %c0_i32_1 = arith.constant 0 : i32
    return %c0_i32, %c0_i32_0 : i32, i32
  }
  func.func @transform_3(%arg0: i32) -> (i32, i32) {
    %c0_i32 = arith.constant 0 : i32
    %c0_i32_0 = arith.constant 0 : i32
    %c0_i32_1 = arith.constant 0 : i32
    return %c0_i32, %c0_i32_0 : i32, i32
  }
  func.func @transform_4(%arg0: i32) -> (i32, i32) {
    %c0_i32 = arith.constant 0 : i32
    %c0_i32_0 = arith.constant 0 : i32
    %c0_i32_1 = arith.constant 0 : i32
    return %c0_i32, %c0_i32_0 : i32, i32
  }
  func.func @transform_5(%arg0: i32) -> (i32, i32) {
    %c0_i32 = arith.constant 0 : i32
    %c0_i32_0 = arith.constant 0 : i32
    return %arg0, %c0_i32 : i32, i32
  }
}

</mosaic_0001>

<bundles_post_ra>
// kernel: cifernet_forward.1
= control target key start
LH: loop header
LB: loop body
LE: loop exit
PB: predicated region body
PF: predicated region fallthrough
CT: control target
= control target key end

     0   :  { %s710_s18 = smov 0   ;;  %s789_s0 = inlined_call_operand.vmem [shape: bf16[64,128], index: 0, kind: input, shape index: {}]   ;;  %s790_s1 = inlined_call_operand.vmem [shape: bf16[128,128], index: 1, kind: input, shape index: {}]   ;;  %s791_s2 = inlined_call_operand.vmem [shape: f32[1,128], index: 2, kind: input, shape index: {}]   ;;  %s792_s3 = inlined_call_operand.vmem [shape: bf16[128,128], index: 3, kind: input, shape index: {}]   ;;  %s793_s4 = inlined_call_operand.vmem [shape: f32[1,128], index: 4, kind: input, shape index: {}]   ;;  %s794_s5 = inlined_call_operand.vmem [shape: f32[64,128], index: 5, kind: output, shape index: {}]  }
   0x1 LB: > { %s555_s19 = sadd.s32 4294967295, %s678_s18   ;;  %p559_p0 = scmp.ge.s32.totalorder %s678_s18, 1  ;;  %s678_s18 = sphi %s710_s18, %s15_s18  }
   0x2   : > { %p188_p1 = scmp.lt.s32.totalorder %s678_s18, 3 }
   0x4   : > { %p189_p2 = pnand %p559_p0, %p188_p1 }
   0x5   : > { %v654_v0 = vld [vmem:[%s790_s1] sm:$0xff] (!%p189_p2)   ;;  %s560_s22 = sshll.u32 (!%p189_p2), %s555_s19, 2  ;;  %v655_v1 = vld [vmem:[%s790_s1 + $0x8] sm:$0xff] (!%p189_p2)   ;;  %v656_v2 = vld [vmem:[%s790_s1 + $0x10] sm:$0xff] (!%p189_p2)  }
   0x6   : > { %192 = sbr.rel (%p189_p2) target bundleno = 480 (0x1e0), region = 40  ;;  %p217_p3 = scmp.lt.s32.totalorder (!%p189_p2), %s560_s22, 7  ;;  %606 = vmatprep.subr.bf16.mxu0 (!%p189_p2), %v654_v0  ;;  %v657_v3 = vld [vmem:[%s790_s1 + $0x18] sm:$0xff] (!%p189_p2)   ;;  %v664_v5 = vld [vmem:[%s792_s3] sm:$0xff] (!%p189_p2)   ;;  %v665_v6 = vld [vmem:[%s792_s3 + $0x8] sm:$0xff] (!%p189_p2)  }
   0x7   : > { %607 = vmatpush3.bf16.msra.mxu0 (!%p189_p2), %v654_v0  ;;  %v658_v7 = vld [vmem:[%s790_s1 + $0x20] sm:$0xff] (!%p189_p2)   ;;  %626 = vmatprep.subr.bf16.mxu1 (!%p189_p2), %v664_v5  ;;  %v659_v8 = vld [vmem:[%s790_s1 + $0x28] sm:$0xff] (!%p189_p2)   ;;  %v666_v9 = vld [vmem:[%s792_s3 + $0x10] sm:$0xff] (!%p189_p2)  }
   0x8   : > { %608 = vmatprep.subr.bf16.mxu0 (!%p189_p2), %v655_v1  ;;  %627 = vmatpush3.bf16.msra.mxu1 (!%p189_p2), %v664_v5  ;;  %v667_v10 = vld [vmem:[%s792_s3 + $0x18] sm:$0xff] (!%p189_p2)   ;;  %v660_v11 = vld [vmem:[%s790_s1 + $0x30] sm:$0xff] (!%p189_p2)   ;;  %v668_v12 = vld [vmem:[%s792_s3 + $0x20] sm:$0xff] (!%p189_p2)  }
   0x9   : > { %628 = vmatprep.subr.bf16.mxu1 (!%p189_p2), %v665_v6  ;;  %v661_v13 = vld [vmem:[%s790_s1 + $0x38] sm:$0xff] (!%p189_p2)   ;;  %v669_v15 = vld [vmem:[%s792_s3 + $0x28] sm:$0xff] (!%p189_p2)   ;;  %v670_v16 = vld [vmem:[%s792_s3 + $0x30] sm:$0xff] (!%p189_p2)  }
   0xa   : > { %v671_v17 = vld [vmem:[%s792_s3 + $0x38] sm:$0xff] (!%p189_p2)   ;;  %v564_v18 = vld [vmem:[%s791_s2] ss:$0 sm:$0xff] (!%p189_p2) }
   0xb   : > { %609 = vmatpush3.bf16.msra.mxu0 (!%p189_p2), %v655_v1  ;;  %v575_v37 = vld [vmem:[%s793_s4] ss:$0 sm:$0xff] (!%p189_p2) }
   0xc   : > { %610 = vmatprep.subr.bf16.mxu0 (!%p189_p2), %v656_v2  ;;  %629 = vmatpush3.bf16.msra.mxu1 (!%p189_p2), %v665_v6 }
   0xd   : > { %s796_s22 = smov (!%p217_p3, %s560_s22), 7  ;;  %630 = vmatprep.subr.bf16.mxu1 %v666_v9 }
   0xe   : > { %s561_s27 = sshll.u32 %s796_s22, 2  ;;  %s563_s11 = sshll.u32 %s796_s22, 3 }
   0xf   : > { %s733_s30 = scalar_lea.vmem %s789_s0, %s561_s27  ;;  %611 = vmatpush3.bf16.msra.mxu0 %v656_v2  ;;  %s226_s16 = scalar_lea.vmem %s794_s5, %s563_s11 }
  0x10   : > { %v662_v4 = vld [vmem:[%s733_s30] sm:$0xff]   ;;  %612 = vmatprep.subr.bf16.mxu0 %v657_v3  ;;  %631 = vmatpush3.bf16.msra.mxu1 %v666_v9  ;;  %v663_v14 = vld [vmem:[%s733_s30 + $0x8] sm:$0xff]  }
  0x11   : > { %622 = vmatprep.mubr.bf16.mxu0 %v662_v4  ;;  %632 = vmatprep.subr.bf16.mxu1 %v667_v10 }
  0x13   : > { %613 = vmatpush3.bf16.msra.mxu0 %v657_v3 }
  0x14   : > { %614 = vmatprep.subr.bf16.mxu0 %v658_v7  ;;  %633 = vmatpush3.bf16.msra.mxu1 %v667_v10 }
  0x15   : > { %634 = vmatprep.subr.bf16.mxu1 %v668_v12 }
  0x17   : > { %615 = vmatpush3.bf16.msra.mxu0 %v658_v7 }
  0x18   : > { %616 = vmatprep.subr.bf16.mxu0 %v659_v8  ;;  %635 = vmatpush3.bf16.msra.mxu1 %v668_v12 }
  0x19   : > { %636 = vmatprep.subr.bf16.mxu1 %v669_v15 }
  0x1b   : > { %617 = vmatpush3.bf16.msra.mxu0 %v659_v8 }
  0x1c   : > { %618 = vmatprep.subr.bf16.mxu0 %v660_v11  ;;  %637 = vmatpush3.bf16.msra.mxu1 %v669_v15 }
  0x1d   : > { %638 = vmatprep.subr.bf16.mxu1 %v670_v16 }
  0x1f   : > { %619 = vmatpush3.bf16.msra.mxu0 %v660_v11 }
  0x20   : > { %620 = vmatprep.subr.bf16.mxu0 %v661_v13  ;;  %639 = vmatpush3.bf16.msra.mxu1 %v670_v16 }
  0x21   : > { %640 = vmatprep.subr.bf16.mxu1 %v671_v17 }
  0x23   : > { %621 = vmatpush3.bf16.msra.mxu0 %v661_v13 }
  0x24   : > { %641 = vmatpush3.bf16.msra.mxu1 %v671_v17 }
  0x26   : > { %623 = vmatmul.mubr.bf16.vlgmr.msra.gmra.mrb[0].mxu0 %v663_v14 }
  0xf9   : > { %v624_v19 = vpop.f32.mrb[0].mxu0 }
  0xfa   : > { %v359_v20 = vadd.f32 %v624_v19, %v564_v18  ;;  %v350_v21 = vpop.f32.mrb[1].mxu0 }
  0xfb   : > { %v351_v22 = vadd.f32 %v564_v18, %v350_v21  ;;  %v625_v23 = vpop.f32.mrb[2].mxu0 }
  0xfc   : > { %v367_v24 = vmul.f32 0.01, %v359_v20  ;;  %v362_v25 = vadd.f32 %v625_v23, %v564_v18  ;;  %v353_v26 = vpop.f32.mrb[3].mxu0 }
  0xfd   : > { %v365_v27 = vmul.f32 0.01, %v351_v22  ;;  %v354_v28 = vadd.f32 %v564_v18, %v353_v26 }
  0xfe   : > { %v368_v29 = vmul.f32 0.01, %v362_v25  ;;  %v371_v31 = vmax.f32 %v359_v20, %v367_v24 }
  0xff   : > { %v366_v30 = vmul.f32 0.01, %v354_v28  ;;  %v369_v33 = vmax.f32 %v351_v22, %v365_v27 }
 0x100   : > { %v372_v32 = vmax.f32 %v362_v25, %v368_v29 }
 0x101   : > { %v370_v34 = vmax.f32 %v354_v28, %v366_v30 }
 0x102   : > { %v374_v35 = vpack.c.bf16 %v372_v32, %v371_v31 }
 0x103   : > { %v373_v36 = vpack.c.bf16 %v370_v34, %v369_v33 }
 0x105   : > { %642 = vmatprep.mubr.bf16.mxu1 %v373_v36 }
 0x106   : > { %643 = vmatmul.mubr.bf16.vlgmr.msra.gmra.mrb[0].mxu1 %v374_v35 }
 0x1d9   : > { %v644_v38 = vpop.f32.mrb[0].mxu1 }
 0x1da   : > { %v480_v39 = vpop.f32.mrb[1].mxu1  ;;  %v489_v44 = vadd.f32 %v644_v38, %v575_v37 }
 0x1db   : > { %v481_v40 = vadd.f32 %v575_v37, %v480_v39  ;;  %v645_v41 = vpop.f32.mrb[2].mxu1 }
 0x1dc   : > { %v483_v42 = vpop.f32.mrb[3].mxu1  ;;  %v492_v45 = vadd.f32 %v645_v41, %v575_v37  ;;  %497 = vst [vmem:[%s226_s16 + $0x10] sm:$0xff] %v489_v44 }
 0x1dd   : > { %495 = vst [vmem:[%s226_s16] sm:$0xff] %v481_v40  ;;  %v484_v43 = vadd.f32 %v575_v37, %v483_v42 }
 0x1de   : > { %498 = vst [vmem:[%s226_s16 + $0x18] sm:$0xff] %v492_v45 }
 0x1df   : > { %496 = vst [vmem:[%s226_s16 + $0x8] sm:$0xff] %v484_v43 }
 0x1e0 PF: > { %s15_s18 = sadd.s32 1, %s678_s18  }
 0x1e1   : > { %p12_p4 = scmp.ge.s32.totalorder %s15_s18, 4  }
 0x1e3   :  { %14 = sbr.rel (!%p12_p4) target bundleno = 1 (0x1), region = 70 }

</bundles_post_ra>
